<compile_context>
chip_gen: v7x
topology: tpu7x:2x2x1
jax: 0.10.0
libtpu: 0.0.40
codegen_flags: <defaults>
</compile_context>

<pallas_src>
import functools

import jax
import jax.numpy as jnp
from jax import lax
from jax.experimental import pallas as pl
from jax.experimental.pallas import tpu as pltpu


def _gem_kernel(scal_ref, x_ref, o_ref, acc_ref, *, eps, hw, tile_hw,
                static_p, need_mask):
    # scal_ref: (2,) f32 in SMEM = [p, 1/p]  (unused when static_p is not None)
    # x_ref:    (tile_rows, tile_hw) input tile in VMEM
    # o_ref:    (tile_rows, 1) output tile in VMEM
    # acc_ref:  (tile_rows, 1) f32 running sum of clamp(x, eps)**p over HW
    k = pl.program_id(1)

    @pl.when(k == 0)
    def _():
        acc_ref[...] = jnp.zeros_like(acc_ref)

    x = x_ref[...].astype(jnp.float32)
    x = jnp.maximum(x, eps)                       # clamp(min=eps) -> x > 0

    if static_p is None:
        p = scal_ref[0]
        xp = jnp.exp(p * jnp.log(x))              # x ** p (x > 0), runtime p
    else:
        xp = x                                    # integer p: pure VALU multiplies
        for _ in range(static_p - 1):
            xp = xp * x

    if need_mask:                                 # ragged last HW tile: zero tail lanes
        col = k * tile_hw + lax.broadcasted_iota(jnp.int32, xp.shape, 1)
        xp = jnp.where(col < hw, xp, 0.0)

    acc_ref[...] += jnp.sum(xp, axis=-1, keepdims=True)

    @pl.when(k == pl.num_programs(1) - 1)
    def _():
        mean = acc_ref[...] * (1.0 / hw)          # avg_pool2d over the full plane
        if static_p is None:
            inv_p = scal_ref[1]                   # 1/p hoisted to the wrapper
            y = jnp.exp(inv_p * jnp.log(mean))    # mean ** (1/p), mean > 0
        elif static_p == 1:
            y = mean
        else:
            y = jnp.power(mean, 1.0 / static_p)   # per-output-row only (cheap)
        o_ref[...] = y.astype(o_ref.dtype)


def _round_up(a, m):
    return -(-a // m) * m


def gem_pool(x, p, eps=1e-6):
    """GeM pooling. x: (N, C, H, W); p: python number or scalar/size-1 array."""
    n, c, h, w = x.shape
    rows = n * c
    hw = h * w
    x2d = x.reshape(rows, hw)                     # pure view, no HBM copy

    itemsize = jnp.dtype(x.dtype).itemsize
    sub = {4: 8, 2: 16, 1: 32}.get(itemsize, 8)   # sublane packing granule

    # Specialize x**p to multiplies when p is statically a small integer.
    static_p = None
    if isinstance(p, (int, float)) and float(p).is_integer() and 1 <= int(p) <= 8:
        static_p = int(p)

    # Tile sizing: ~2 MiB per input block (double-buffered -> ~4 MiB VMEM).
    max_block_bytes = 2 * 1024 * 1024
    row_bytes = hw * itemsize
    if sub * row_bytes <= max_block_bytes:
        tile_hw = hw                              # whole plane per block, grid_k == 1
        tile_rows = min(max(sub, (max_block_bytes // row_bytes) // sub * sub), 1024)
        need_mask = False
    else:
        # Huge feature maps: split the HW reduction across the last grid axis.
        tile_rows = sub
        tile_hw = min(hw, max(128, (max_block_bytes // (sub * itemsize)) // 128 * 128))
        need_mask = (hw % tile_hw) != 0

    rows_rounded = _round_up(rows, sub)
    tile_rows = min(tile_rows, rows_rounded)
    # Keep >= 2 row-grid steps when there is enough work (v7x dual TensorCore).
    if tile_rows >= rows_rounded and rows_rounded >= 2 * sub:
        tile_rows = _round_up(rows_rounded // 2, sub)

    grid = (pl.cdiv(rows, tile_rows), pl.cdiv(hw, tile_hw))

    if static_p is None:
        p_val = jnp.asarray(p, jnp.float32).reshape(-1)[0]
        scal = jnp.stack([p_val, 1.0 / p_val])    # 1/p computed once, outside kernel
    else:
        scal = jnp.zeros((2,), jnp.float32)       # unused placeholder

    kernel = functools.partial(
        _gem_kernel, eps=float(eps), hw=hw, tile_hw=tile_hw,
        static_p=static_p, need_mask=need_mask)

    extra_kwargs = {}
    if hasattr(pl, "CostEstimate"):
        extra_kwargs["cost_estimate"] = pl.CostEstimate(
            flops=3 * rows * hw,
            transcendentals=(2 * rows * hw + 2 * rows) if static_p is None else 2 * rows,
            bytes_accessed=rows * hw * itemsize + rows * itemsize,
        )

    out = pl.pallas_call(
        kernel,
        out_shape=jax.ShapeDtypeStruct((rows, 1), x.dtype),
        grid=grid,
        in_specs=[
            pl.BlockSpec(memory_space=pltpu.SMEM),                    # [p, 1/p]
            pl.BlockSpec((tile_rows, tile_hw), lambda i, k: (i, k)),  # x tile
        ],
        out_specs=pl.BlockSpec((tile_rows, 1), lambda i, k: (i, 0)),
        scratch_shapes=[pltpu.VMEM((tile_rows, 1), jnp.float32)],
        compiler_params=pltpu.CompilerParams(
            dimension_semantics=("parallel", "arbitrary")),
        **extra_kwargs,
    )(scal, x2d)

    return out.reshape(n, c, 1, 1)


if __name__ == "__main__":
    key = jax.random.PRNGKey(0)
    N, C, H, W = 2, 4, 16, 16
    x = jax.random.normal(key, (N, C, H, W), dtype=jnp.float32)

    eps = 1e-6
    # GeM.__init__: p = nn.Parameter(torch.ones(1) * 3)  -> runtime (learnable) p
    p_param = jnp.ones((1,), dtype=jnp.float32) * 3.0

    y_dyn = jax.block_until_ready(gem_pool(x, p_param, eps))   # runtime-p path
    y_static = jax.block_until_ready(gem_pool(x, 3.0, eps))    # static-p (p=3) path

    # Pure-JAX reference (mirrors the PyTorch forward exactly)
    x_c = jnp.maximum(x, eps)
    ref = jnp.power(jnp.mean(jnp.power(x_c, 3.0), axis=(2, 3), keepdims=True),
                    1.0 / 3.0)

    assert y_dyn.shape == (N, C, 1, 1), y_dyn.shape
    assert y_static.shape == (N, C, 1, 1), y_static.shape
    assert jnp.allclose(y_dyn, ref, rtol=1e-4, atol=1e-5), (
        f"runtime-p max abs err {jnp.max(jnp.abs(y_dyn - ref))}")
    assert jnp.allclose(y_static, ref, rtol=1e-4, atol=1e-5), (
        f"static-p max abs err {jnp.max(jnp.abs(y_static - ref))}")
    print("KERNEL_OK")
</pallas_src>

<mosaic_0001>
module attributes {stable_mosaic.version = 11 : i64} {
  func.func @_gem_kernel(%arg0: i32, %arg1: i32, %arg2: memref<2xf32, #tpu.memory_space<smem>>, %arg3: memref<8x256xf32, #tpu.memory_space<vmem>>, %arg4: memref<8x1xf32, #tpu.memory_space<vmem>>, %arg5: memref<8x1xf32, #tpu.memory_space<vmem>>) attributes {dimension_semantics = [#tpu.dimension_semantics<parallel>, #tpu.dimension_semantics<arbitrary>], iteration_bounds = array<i64: 1, 1>, scalar_prefetch = 0 : i64, scratch_operands = 1 : i64, tpu.core_type = #tpu.core_type<tc>, window_params = [{transform_indices = @transform_0, window_bounds = array<i64: 2>}, {transform_indices = @transform_1, window_bounds = array<i64: 8, 256>}, {transform_indices = @transform_2, window_bounds = array<i64: 8, 1>}]} {
    %c0_i32 = arith.constant 0 : i32
    %0 = arith.cmpi eq, %arg1, %c0_i32 : i32
    %1 = arith.extui %0 : i1 to i32
    %c0_i32_0 = arith.constant 0 : i32
    %2 = arith.cmpi ne, %1, %c0_i32_0 : i32
    scf.if %2 {
      %cst_10 = arith.constant 0.000000e+00 : f32
      %19 = vector.broadcast %cst_10 : f32 to vector<8x1xf32>
      %c0_11 = arith.constant 0 : index
      %c0_12 = arith.constant 0 : index
      %20 = vector.load %arg5[%c0_11, %c0_12] : memref<8x1xf32, #tpu.memory_space<vmem>>, vector<8x1xf32>
      tpu.vector_store %arg5[%c0_11, %c0_12], %19 {strides = array<i32>} : memref<8x1xf32, #tpu.memory_space<vmem>>, vector<8x1xf32>,
    } else {
    }
    %c0 = arith.constant 0 : index
    %c0_1 = arith.constant 0 : index
    %3 = vector.load %arg3[%c0, %c0_1] : memref<8x256xf32, #tpu.memory_space<vmem>>, vector<8x256xf32>
    %cst = arith.constant 9.99999997E-7 : f32
    %4 = vector.broadcast %cst : f32 to vector<8x256xf32>
    %5 = arith.maximumf %3, %4 : vector<8x256xf32>
    %c0_2 = arith.constant 0 : index
    %6 = memref.load %arg2[%c0_2] : memref<2xf32, #tpu.memory_space<smem>>
    %7 = math.log %5 : vector<8x256xf32>
    %8 = vector.broadcast %6 : f32 to vector<8x256xf32>
    %9 = arith.mulf %8, %7 : vector<8x256xf32>
    %10 = math.exp %9 : vector<8x256xf32>
    %c0_3 = arith.constant 0 : index
    %c0_4 = arith.constant 0 : index
    %11 = vector.load %arg5[%c0_3, %c0_4] : memref<8x1xf32, #tpu.memory_space<vmem>>, vector<8x1xf32>
    %cst_5 = arith.constant dense<0.000000e+00> : vector<8xf32>
    %12 = vector.multi_reduction <add>, %10, %cst_5 [1] : vector<8x256xf32> to vector<8xf32>
    %13 = vector.shape_cast %12 : vector<8xf32> to vector<8x1xf32>
    %14 = arith.addf %11, %13 : vector<8x1xf32>
    %c0_6 = arith.constant 0 : index
    %c0_7 = arith.constant 0 : index
    %15 = vector.load %arg5[%c0_6, %c0_7] : memref<8x1xf32, #tpu.memory_space<vmem>>, vector<8x1xf32>
    tpu.vector_store %arg5[%c0_6, %c0_7], %14 {strides = array<i32>} : memref<8x1xf32, #tpu.memory_space<vmem>>, vector<8x1xf32>,
    %c0_i32_8 = arith.constant 0 : i32
    %16 = arith.cmpi eq, %arg1, %c0_i32_8 : i32
    %17 = arith.extui %16 : i1 to i32
    %c0_i32_9 = arith.constant 0 : i32
    %18 = arith.cmpi ne, %17, %c0_i32_9 : i32
    scf.if %18 {
      %c0_10 = arith.constant 0 : index
      %c0_11 = arith.constant 0 : index
      %19 = vector.load %arg5[%c0_10, %c0_11] : memref<8x1xf32, #tpu.memory_space<vmem>>, vector<8x1xf32>
      %cst_12 = arith.constant 3.906250e-03 : f32
      %20 = vector.broadcast %cst_12 : f32 to vector<8x1xf32>
      %21 = arith.mulf %19, %20 : vector<8x1xf32>
      %c1 = arith.constant 1 : index
      %22 = memref.load %arg2[%c1] : memref<2xf32, #tpu.memory_space<smem>>
      %23 = math.log %21 : vector<8x1xf32>
      %24 = vector.broadcast %22 : f32 to vector<8x1xf32>
      %25 = arith.mulf %24, %23 : vector<8x1xf32>
      %26 = math.exp %25 : vector<8x1xf32>
      %c0_13 = arith.constant 0 : index
      %c0_14 = arith.constant 0 : index
      %27 = vector.load %arg4[%c0_13, %c0_14] : memref<8x1xf32, #tpu.memory_space<vmem>>, vector<8x1xf32>
      tpu.vector_store %arg4[%c0_13, %c0_14], %26 {strides = array<i32>} : memref<8x1xf32, #tpu.memory_space<vmem>>, vector<8x1xf32>,
    } else {
    }
    return
  }
  func.func @transform_0(%arg0: i32, %arg1: i32) -> i32 {
    %c0_i32 = arith.constant 0 : i32
    %c0_i32_0 = arith.constant 0 : i32
    return %c0_i32 : i32
  }
  func.func @transform_1(%arg0: i32, %arg1: i32) -> (i32, i32) {
    %c0_i32 = arith.constant 0 : i32
    return %arg0, %arg1 : i32, i32
  }
  func.func @transform_2(%arg0: i32, %arg1: i32) -> (i32, i32) {
    %c0_i32 = arith.constant 0 : i32
    %c0_i32_0 = arith.constant 0 : i32
    return %arg0, %c0_i32 : i32, i32
  }
}

</mosaic_0001>

<bundles_post_ra>
// kernel: tpu_custom_call.1
= control target key start
LH: loop header
LB: loop body
LE: loop exit
PB: predicated region body
PF: predicated region fallthrough
CT: control target
= control target key end

     0   :  { %7 = vsyncpa [#allocation5], 0  ;;  %s182_s0 = inlined_call_operand.hbm [shape: f32[2], index: 0, kind: input, shape index: {}]   ;;  %s183_s1 = inlined_call_operand.hbm [shape: f32[8,256], index: 1, kind: input, shape index: {}]   ;;  %s184_s2 = inlined_call_operand.vmem [shape: f32[8,1], index: 2, kind: output, shape index: {}]  }
   0x1   :  { %8 = vsyncpa [#allocation4], 0  ;;  %s98_s11 = scalar_lea.hbm %s182_s0, 16 }
   0x2   :  { %p99_p0 = scmp.ne.s32.totalorder %s182_s0, %s98_s11  ;;  %p102_p1 = scmp.lt.u32.totalorder %s98_s11, %s182_s0 }
   0x4   :  { %p104_p2 = pnand %p102_p1, %p99_p0 }
   0x6   :  { %107 = shalt.err (!%p104_p2)
}
   0x7   :  { %s134_s16 = smov [#allocation3]   ;;  %s135_s19 = smov [#allocation6]  }
   0x8   :  { %16 = dma.hbm_to_smem %s182_s0, 16, %s134_s16, [#allocation5]  }
   0x9   :  { %s23_s20 = sshll.u32 %s135_s19, 4  ;;  %s108_s23 = scalar_lea.hbm %s183_s1, 256  ;;  %s24_s20 = int_to_ptr.vmem [resolvable:$true] %s23_s20 }
   0xa   :  { %p109_p3 = scmp.ne.s32.totalorder %s183_s1, %s108_s23  ;;  %p112_p4 = scmp.lt.u32.totalorder %s108_s23, %s183_s1 }
   0xc   :  { %p114_p5 = pnand %p112_p4, %p109_p3 }
   0xe   :  { %117 = shalt.err (!%p114_p5)
}
   0xf   :  { %s118_s28 = scalar_lea.vmem %s24_s20, 256  ;;  %p123_p7 = scmp.lt.s32.totalorder %s24_s20, %s24_s20 }
  0x10   :  { %p119_p6 = scmp.ne.s32.totalorder %s24_s20, %s118_s28  ;;  %p124_p8 = scmp.lt.s32.totalorder %s118_s28, %s118_s28 }
  0x12   :  { %p125_p9 = por %p124_p8, %p123_p7 }
  0x14   :  { %p126_p10 = pnand %p125_p9, %p119_p6 }
  0x16   :  { %129 = shalt.err (!%p126_p10)
}
  0x17   :  { %26 = dma.hbm_to_vmem [thread:$0]  %s183_s1, 256, %s24_s20, [#allocation4]  }
  0x18   :  { %130 = dma.done.wait [#allocation5], 16  }
  0x19   :  { %131 = vsyncadd [#allocation5], 4294967280 }
  0x1a   :  { %132 = dma.done.wait [#allocation4], 256  }
  0x1b   :  { %133 = vsyncadd [#allocation4], 4294967040 }
  0x1c   :  { %33 = sfence }
  0x1d   :  { %v40_v0 = vld [vmem:[#allocation6] sm:$0xff]  ;;  %v41_v1 = vld [vmem:[#allocation6 + $0x8] sm:$0xff]  ;;  %vm38_vm0 = vcmask 7168   ;;  %v136_v4 = vmov 0.0   ;;  %s44_s30 = sld [smem:[#allocation3]]  ;;  %s82_s1 = sld [smem:[#allocation3 + $0x1]] }
  0x1e   :  { %v42_v2 = vmax.f32 %v40_v0, 1e-06  ;;  %v43_v3 = vmax.f32 %v41_v1, 1e-06  ;;  %39 = vst.msk [vmem:[#allocation2] sm:$0xff] %vm38_vm0, %v136_v4 }
  0x20   :  { %86 = vlog2.f32 %v42_v2 }
  0x21   :  { %88 = vlog2.f32 %v43_v3 }
  0x23   :  { %v49_v6 = vstv %s44_s30  ;;  %v71_v23 = vstv %s82_s1 }
  0x25   :  { %v56_v17 = vld [vmem:[#allocation2] sm:$0xff] }
  0x2a   :  { %v87_v5 = vpop.eup %86 }
  0x2b   :  { %v89_v7 = vpop.eup %88  ;;  %v46_v8 = vmul.f32 0.6931472, %v87_v5 }
  0x2c   :  { %v48_v9 = vmul.f32 0.6931472, %v89_v7 }
  0x2d   :  { %v50_v10 = vmul.f32 %v49_v6, %v46_v8 }
  0x2e   :  { %v51_v11 = vmul.f32 %v49_v6, %v48_v9 }
  0x2f   :  { %v52_v12 = vmul.f32 1.442695, %v50_v10 }
  0x30   :  { %v54_v13 = vmul.f32 1.442695, %v51_v11 }
  0x31   :  { %90 = vpow2.f32 %v52_v12 }
  0x32   :  { %92 = vpow2.f32 %v54_v13 }
  0x3b   :  { %v91_v14 = vpop.eup %90 }
  0x3c   :  { %v93_v15 = vpop.eup %92 }
  0x3d   :  { %v57_v16 = vadd.f32 %v93_v15, %v91_v14 }
  0x3f   :  { %58 = vadd.xlane.f32.xlu0 %v57_v16 }
  0xcc   :  { %v59_v18 = vpop.xlane.xlu0 %58 }
  0xcd   :  { %v60_v19 = vadd.f32 %v59_v18, %v56_v17 }
  0xcf   :  { %62 = vst.msk [vmem:[#allocation2] sm:$0xff] %vm38_vm0, %v60_v19 }
  0xd6   :  { %v66_v20 = vld [vmem:[#allocation2] sm:$0xff] }
  0xd7   :  { %v67_v21 = vmul.f32 0.00390625, %v66_v20 }
  0xd9   :  { %94 = vlog2.f32 %v67_v21 }
  0xe3   :  { %v95_v22 = vpop.eup %94 }
  0xe4   :  { %v70_v24 = vmul.f32 0.6931472, %v95_v22 }
  0xe6   :  { %v72_v25 = vmul.f32 %v71_v23, %v70_v24 }
  0xe8   :  { %v73_v26 = vmul.f32 1.442695, %v72_v25 }
  0xea   :  { %96 = vpow2.f32 %v73_v26 }
  0xf4   :  { %v97_v27 = vpop.eup %96 }
  0xf5   :  { %75 = vst.msk [vmem:[%s184_s2] sm:$0xff] %vm38_vm0, %v97_v27 }
  0xf6   :  { %80 = vsyncpa [#allocation4], 1 }
  0xf7   :  { %81 = vsyncpa [#allocation5], 1 }

</bundles_post_ra>
